<compile_context>
chip_gen: v5e
topology: v5e:2x2
jax: 0.10.0
libtpu: 0.0.40
codegen_flags: <defaults>
</compile_context>

<pallas_src>
import jax
import jax.numpy as jnp
from jax.experimental import pallas as pl
from jax.experimental.pallas import tpu as pltpu

_HIDDEN_PAD = 128  # hidden dim (100) padded to the vreg lane/sublane width


def _round_up(n: int, m: int) -> int:
    return ((n + m - 1) // m) * m


def _mlp_kernel(x_ref, w1_ref, b1_ref, w2_ref, b2_ref, o_ref):
    # x_ref : (1, TB)          batch tile, lane-dense
    # w1_ref: (128, 1)         fc1 weight column (hidden units on sublanes)
    # b1_ref: (128, 1)         fc1 bias column
    # w2_ref: (128, 1)         fc2 weight column (zero in padded rows)
    # b2_ref: (1, 1)  SMEM     fc2 bias scalar
    # o_ref : (1, TB)          output tile, lane-dense
    x = x_ref[...]                                        # (1, TB)
    h = w1_ref[...] * x + b1_ref[...]                     # (128, TB)  VPU broadcast FMA
    h = jnp.maximum(h, 0.0)                               # ReLU
    y = jnp.sum(w2_ref[...] * h, axis=0, keepdims=True)   # (1, TB)    sublane reduce
    o_ref[...] = y + b2_ref[0, 0]


def my_classifier_forward(x, w1, b1, w2, b2, *, block_batch=1024):
    """x: (B, 1) float32 -> (B, 1) float32.

    Weights are stored transposed vs. PyTorch, i.e. (in_features, out_features):
    w1 (1, 100), b1 (100,), w2 (100, 1), b2 (1,), so the math is
    y = relu(x @ w1 + b1) @ w2 + b2 — identical to the nn.Module forward.
    """
    B = x.shape[0]
    H = w1.shape[1]
    assert w1.shape == (1, H) and b1.shape == (H,)
    assert w2.shape == (H, 1) and b2.shape == (1,)
    assert H <= _HIDDEN_PAD

    f32 = jnp.float32
    # Zero-pad the hidden dim to 128 and lay the per-hidden-unit params out as
    # (128, 1) columns (hidden units on the sublane axis).
    w1_col = jnp.zeros((_HIDDEN_PAD, 1), f32).at[:H, 0].set(w1.reshape(-1).astype(f32))
    b1_col = jnp.zeros((_HIDDEN_PAD, 1), f32).at[:H, 0].set(b1.astype(f32))
    w2_col = jnp.zeros((_HIDDEN_PAD, 1), f32).at[:H, 0].set(w2.reshape(-1).astype(f32))
    b2_smem = b2.reshape(1, 1).astype(f32)

    # Lane-dense batch layout: flatten (B, 1) to a row, pad the batch up to a
    # multiple of the batch tile TB (itself a multiple of 128), tile over grid.
    block_batch = _round_up(block_batch, 128)
    tb = min(block_batch, _round_up(B, 128))
    b_pad = _round_up(B, tb)
    g = b_pad // tb
    x_row = jnp.pad(x.reshape(-1).astype(f32), (0, b_pad - B)).reshape(g, 1, tb)

    out = pl.pallas_call(
        _mlp_kernel,
        out_shape=jax.ShapeDtypeStruct((g, 1, tb), f32),
        grid=(g,),
        in_specs=[
            pl.BlockSpec((None, 1, tb), lambda i: (i, 0, 0)),      # x batch tile
            pl.BlockSpec((_HIDDEN_PAD, 1), lambda i: (0, 0)),      # w1 (resident)
            pl.BlockSpec((_HIDDEN_PAD, 1), lambda i: (0, 0)),      # b1 (resident)
            pl.BlockSpec((_HIDDEN_PAD, 1), lambda i: (0, 0)),      # w2 (resident)
            pl.BlockSpec(memory_space=pltpu.MemorySpace.SMEM),     # b2 scalar
        ],
        out_specs=pl.BlockSpec((None, 1, tb), lambda i: (i, 0, 0)),
        compiler_params=pltpu.CompilerParams(
            dimension_semantics=("parallel",),
        ),
    )(x_row, w1_col, b1_col, w2_col, b2_smem)

    return out.reshape(b_pad)[:B].reshape(B, 1)


def init_params(key):
    """Deterministic init mimicking PyTorch nn.Linear (uniform ±1/sqrt(fan_in))."""
    k1, k2, k3, k4 = jax.random.split(key, 4)
    bound1 = 1.0 / jnp.sqrt(1.0)    # fc1: in_features = 1
    bound2 = 1.0 / jnp.sqrt(100.0)  # fc2: in_features = 100
    w1 = jax.random.uniform(k1, (1, 100), jnp.float32, -bound1, bound1)   # (in, out)
    b1 = jax.random.uniform(k2, (100,), jnp.float32, -bound1, bound1)
    w2 = jax.random.uniform(k3, (100, 1), jnp.float32, -bound2, bound2)   # (in, out)
    b2 = jax.random.uniform(k4, (1,), jnp.float32, -bound2, bound2)
    return w1, b1, w2, b2


if __name__ == "__main__":
    key = jax.random.PRNGKey(0)
    pkey, xkey, xkey2 = jax.random.split(key, 3)
    w1, b1, w2, b2 = init_params(pkey)

    def ref_forward(xv):
        h = jnp.maximum(xv @ w1 + b1[None, :], 0.0)
        return h @ w2 + b2[None, :]

    # Small batch: single grid step (padded to one 128-lane tile).
    batch = 8
    x = jax.random.normal(xkey, (batch, 1), jnp.float32)
    out = jax.block_until_ready(my_classifier_forward(x, w1, b1, w2, b2))
    assert out.shape == (batch, 1)
    assert jnp.allclose(out, ref_forward(x), atol=1e-5, rtol=1e-5)

    # Larger batch exercising multiple grid tiles (TB=128 -> 3 tiles) plus
    # the un-padding path (300 is not a multiple of 128).
    x2 = jax.random.normal(xkey2, (300, 1), jnp.float32)
    out2 = jax.block_until_ready(
        my_classifier_forward(x2, w1, b1, w2, b2, block_batch=128))
    assert out2.shape == (300, 1)
    assert jnp.allclose(out2, ref_forward(x2), atol=1e-5, rtol=1e-5)

    print("KERNEL_OK")
</pallas_src>

<mosaic_0001>
module attributes {stable_mosaic.version = 11 : i64} {
  func.func @_mlp_kernel(%arg0: i32, %arg1: memref<1x1x128xf32, #tpu.memory_space<vmem>>, %arg2: memref<128x1xf32, #tpu.memory_space<vmem>>, %arg3: memref<128x1xf32, #tpu.memory_space<vmem>>, %arg4: memref<128x1xf32, #tpu.memory_space<vmem>>, %arg5: memref<1x1xf32, #tpu.memory_space<smem>>, %arg6: memref<1x1x128xf32, #tpu.memory_space<vmem>>) attributes {dimension_semantics = [#tpu.dimension_semantics<parallel>], iteration_bounds = array<i64: 1>, scalar_prefetch = 0 : i64, scratch_operands = 0 : i64, tpu.core_type = #tpu.core_type<tc>, window_params = [{transform_indices = @transform_0, window_bounds = array<i64: 1, 1, 128>}, {pipeline_mode = #tpu.pipeline_mode<synchronous>, transform_indices = @transform_1, window_bounds = array<i64: 128, 1>}, {pipeline_mode = #tpu.pipeline_mode<synchronous>, transform_indices = @transform_2, window_bounds = array<i64: 128, 1>}, {pipeline_mode = #tpu.pipeline_mode<synchronous>, transform_indices = @transform_3, window_bounds = array<i64: 128, 1>}, {transform_indices = @transform_4, window_bounds = array<i64: 1, 1>}, {transform_indices = @transform_5, window_bounds = array<i64: 1, 1, 128>}]} {
    %c0 = arith.constant 0 : index
    %c0_0 = arith.constant 0 : index
    %c0_1 = arith.constant 0 : index
    %0 = vector.load %arg1[%c0, %c0_0, %c0_1] : memref<1x1x128xf32, #tpu.memory_space<vmem>>, vector<1x1x128xf32>
    %1 = vector.shape_cast %0 : vector<1x1x128xf32> to vector<1x128xf32>
    %c0_2 = arith.constant 0 : index
    %c0_3 = arith.constant 0 : index
    %2 = vector.load %arg2[%c0_2, %c0_3] : memref<128x1xf32, #tpu.memory_space<vmem>>, vector<128x1xf32>
    %3 = vector.broadcast %2 : vector<128x1xf32> to vector<128x128xf32>
    %4 = vector.broadcast %1 : vector<1x128xf32> to vector<128x128xf32>
    %5 = arith.mulf %3, %4 : vector<128x128xf32>
    %c0_4 = arith.constant 0 : index
    %c0_5 = arith.constant 0 : index
    %6 = vector.load %arg3[%c0_4, %c0_5] : memref<128x1xf32, #tpu.memory_space<vmem>>, vector<128x1xf32>
    %7 = vector.broadcast %6 : vector<128x1xf32> to vector<128x128xf32>
    %8 = arith.addf %5, %7 : vector<128x128xf32>
    %cst = arith.constant 0.000000e+00 : f32
    %9 = vector.broadcast %cst : f32 to vector<128x128xf32>
    %10 = arith.maximumf %8, %9 : vector<128x128xf32>
    %c0_6 = arith.constant 0 : index
    %c0_7 = arith.constant 0 : index
    %11 = vector.load %arg4[%c0_6, %c0_7] : memref<128x1xf32, #tpu.memory_space<vmem>>, vector<128x1xf32>
    %12 = vector.broadcast %11 : vector<128x1xf32> to vector<128x128xf32>
    %13 = arith.mulf %12, %10 : vector<128x128xf32>
    %cst_8 = arith.constant dense<0.000000e+00> : vector<128xf32>
    %14 = vector.multi_reduction <add>, %13, %cst_8 [0] : vector<128x128xf32> to vector<128xf32>
    %15 = vector.shape_cast %14 : vector<128xf32> to vector<1x128xf32>
    %c0_9 = arith.constant 0 : index
    %c0_10 = arith.constant 0 : index
    %16 = memref.load %arg5[%c0_9, %c0_10] : memref<1x1xf32, #tpu.memory_space<smem>>
    %17 = vector.broadcast %16 : f32 to vector<1x128xf32>
    %18 = arith.addf %15, %17 : vector<1x128xf32>
    %c0_11 = arith.constant 0 : index
    %c0_12 = arith.constant 0 : index
    %c0_13 = arith.constant 0 : index
    %19 = vector.load %arg6[%c0_11, %c0_12, %c0_13] : memref<1x1x128xf32, #tpu.memory_space<vmem>>, vector<1x1x128xf32>
    %20 = vector.shape_cast %19 : vector<1x1x128xf32> to vector<1x128xf32>
    %21 = vector.shape_cast %18 : vector<1x128xf32> to vector<1x1x128xf32>
    tpu.vector_store %arg6[%c0_11, %c0_12, %c0_13], %21 {strides = array<i32>} : memref<1x1x128xf32, #tpu.memory_space<vmem>>, vector<1x1x128xf32>,
    return
  }
  func.func @transform_0(%arg0: i32) -> (i32, i32, i32) {
    %c0_i32 = arith.constant 0 : i32
    %c0_i32_0 = arith.constant 0 : i32
    %c0_i32_1 = arith.constant 0 : i32
    return %arg0, %c0_i32, %c0_i32_0 : i32, i32, i32
  }
  func.func @transform_1(%arg0: i32) -> (i32, i32) {
    %c0_i32 = arith.constant 0 : i32
    %c0_i32_0 = arith.constant 0 : i32
    %c0_i32_1 = arith.constant 0 : i32
    return %c0_i32, %c0_i32_0 : i32, i32
  }
  func.func @transform_2(%arg0: i32) -> (i32, i32) {
    %c0_i32 = arith.constant 0 : i32
    %c0_i32_0 = arith.constant 0 : i32
    %c0_i32_1 = arith.constant 0 : i32
    return %c0_i32, %c0_i32_0 : i32, i32
  }
  func.func @transform_3(%arg0: i32) -> (i32, i32) {
    %c0_i32 = arith.constant 0 : i32
    %c0_i32_0 = arith.constant 0 : i32
    %c0_i32_1 = arith.constant 0 : i32
    return %c0_i32, %c0_i32_0 : i32, i32
  }
  func.func @transform_4(%arg0: i32) -> (i32, i32) {
    %c0_i32 = arith.constant 0 : i32
    %c0_i32_0 = arith.constant 0 : i32
    %c0_i32_1 = arith.constant 0 : i32
    return %c0_i32, %c0_i32_0 : i32, i32
  }
  func.func @transform_5(%arg0: i32) -> (i32, i32, i32) {
    %c0_i32 = arith.constant 0 : i32
    %c0_i32_0 = arith.constant 0 : i32
    %c0_i32_1 = arith.constant 0 : i32
    return %arg0, %c0_i32, %c0_i32_0 : i32, i32, i32
  }
}

</mosaic_0001>

<bundles_post_ra>
// kernel: tpu_custom_call.1
= control target key start
LH: loop header
LB: loop body
LE: loop exit
PB: predicated region body
PF: predicated region fallthrough
CT: control target
= control target key end

     0   :  { %v451_v3 = vmov 0   ;;  %s699_s0 = inlined_call_operand.vmem [shape: f32[1,1,128], index: 0, kind: input, shape index: {}]   ;;  %s700_s1 = inlined_call_operand.vmem [shape: f32[128,1], index: 1, kind: input, shape index: {}]   ;;  %s701_s2 = inlined_call_operand.vmem [shape: f32[128,1], index: 2, kind: input, shape index: {}]   ;;  %s702_s3 = inlined_call_operand.vmem [shape: f32[128,1], index: 3, kind: input, shape index: {}]   ;;  %s703_s4 = inlined_call_operand.<no memory space> [shape: f32[1,1], index: 4, kind: input, shape index: {}]   ;;  %s704_s5 = inlined_call_operand.hbm [shape: f32[1,1,128], index: 5, kind: output, shape index: {}]  }
   0x1   :  { %v27_v0 = vld [vmem:[%s700_s1 + $0x20] sm:$0xff]  ;;  %v25_v1 = vld [vmem:[%s700_s1 + $0x10] sm:$0xff]  ;;  %423 = vset.pattern.permute.xlu2 %v451_v3  ;;  %422 = vset.pattern.permute.xlu1 %v451_v3 }
   0x2   :  { %v23_v2 = vld [vmem:[%s700_s1] sm:$0xff]  ;;  %421 = vset.pattern.permute.xlu0 %v451_v3  ;;  %61 = vperm.xlu2 %423, %v27_v0  }
   0x3   :  { %51 = vperm.xlu1 %422, %v25_v1   ;;  %41 = vperm.xlu0 %421, %v23_v2  }
   0x4   :  { %11 = vsyncpa [#allocation4], 0  ;;  %v28_v4 = vld [vmem:[%s700_s1 + $0x28] sm:$0xff]  ;;  %v26_v5 = vld [vmem:[%s700_s1 + $0x18] sm:$0xff]  ;;  %s452_s12 = smov [#allocation3]   ;;  %s410_s15 = sshll.u32 %s704_s5, 4  ;;  %s411_s15 = int_to_ptr.hbm [resolvable:$true] %s410_s15 }
   0x5   :  { %v24_v6 = vld [vmem:[%s700_s1 + $0x8] sm:$0xff]  ;;  %v31_v7 = vld [vmem:[%s700_s1 + $0x40] sm:$0xff]  ;;  %v30_v8 = vld [vmem:[%s700_s1 + $0x38] sm:$0xff] }
   0x6   :  { %v29_v9 = vld [vmem:[%s700_s1 + $0x30] sm:$0xff]  ;;  %v34_v10 = vld [vmem:[%s700_s1 + $0x58] sm:$0xff]  ;;  %v32_v12 = vld [vmem:[%s700_s1 + $0x48] sm:$0xff] }
   0x7   :  { %v33_v11 = vld [vmem:[%s700_s1 + $0x50] sm:$0xff]  ;;  %v36_v14 = vld [vmem:[%s700_s1 + $0x68] sm:$0xff]  ;;  %v35_v15 = vld [vmem:[%s700_s1 + $0x60] sm:$0xff] }
   0x8   :  { %v37_v13 = vld [vmem:[%s700_s1 + $0x70] sm:$0xff]  ;;  %v139_v16 = vld [vmem:[%s701_s2 + $0x8] sm:$0xff]  ;;  %v138_v17 = vld [vmem:[%s701_s2] sm:$0xff] }
   0x9   :  { %v38_v18 = vld [vmem:[%s700_s1 + $0x78] sm:$0xff]  ;;  %v142_v19 = vld [vmem:[%s701_s2 + $0x20] sm:$0xff]  ;;  %v140_v21 = vld [vmem:[%s701_s2 + $0x10] sm:$0xff] }
   0xa   :  { %66 = vperm.xlu2 %423, %v28_v4   ;;  %v141_v20 = vld [vmem:[%s701_s2 + $0x18] sm:$0xff]  ;;  %v144_v23 = vld [vmem:[%s701_s2 + $0x30] sm:$0xff]  ;;  %v143_v24 = vld [vmem:[%s701_s2 + $0x28] sm:$0xff] }
   0xb   :  { %56 = vperm.xlu1 %422, %v26_v5   ;;  %46 = vperm.xlu0 %421, %v24_v6   ;;  %v145_v22 = vld [vmem:[%s701_s2 + $0x38] sm:$0xff]  ;;  %v148_v25 = vld [vmem:[%s701_s2 + $0x50] sm:$0xff]  ;;  %v147_v26 = vld [vmem:[%s701_s2 + $0x48] sm:$0xff] }
   0xc   :  { %v146_v27 = vld [vmem:[%s701_s2 + $0x40] sm:$0xff]  ;;  %v151_v28 = vld [vmem:[%s701_s2 + $0x68] sm:$0xff]  ;;  %v149_v30 = vld [vmem:[%s701_s2 + $0x58] sm:$0xff] }
   0xd   :  { %v150_v29 = vld [vmem:[%s701_s2 + $0x60] sm:$0xff]  ;;  %v153_v32 = vld [vmem:[%s701_s2 + $0x78] sm:$0xff]  ;;  %v152_v33 = vld [vmem:[%s701_s2 + $0x70] sm:$0xff]  ;;  %s408_s2 = sshll.u32 %s452_s12, 4  ;;  %s409_s2 = int_to_ptr.vmem [resolvable:$true] %s408_s2 }
   0xe   :  { %v266_v31 = vld [vmem:[%s702_s3] sm:$0xff]  ;;  %v269_v34 = vld [vmem:[%s702_s3 + $0x18] sm:$0xff]  ;;  %v268_v35 = vld [vmem:[%s702_s3 + $0x10] sm:$0xff] }
   0xf   :  { %v267_v36 = vld [vmem:[%s702_s3 + $0x8] sm:$0xff]  ;;  %v272_v38 = vld [vmem:[%s702_s3 + $0x30] sm:$0xff]  ;;  %v270_v40 = vld [vmem:[%s702_s3 + $0x20] sm:$0xff] }
  0x10   :  { %v271_v39 = vld [vmem:[%s702_s3 + $0x28] sm:$0xff]  ;;  %v274_v43 = vld [vmem:[%s702_s3 + $0x40] sm:$0xff]  ;;  %v273_v44 = vld [vmem:[%s702_s3 + $0x38] sm:$0xff] }
  0x11   :  { %v275_v42 = vld [vmem:[%s702_s3 + $0x48] sm:$0xff]  ;;  %v278_v46 = vld [vmem:[%s702_s3 + $0x60] sm:$0xff]  ;;  %v277_v47 = vld [vmem:[%s702_s3 + $0x58] sm:$0xff] }
  0x12   :  { %81 = vperm.xlu2 %423, %v31_v7   ;;  %v276_v48 = vld [vmem:[%s702_s3 + $0x50] sm:$0xff]  ;;  %v281_v52 = vld [vmem:[%s702_s3 + $0x78] sm:$0xff]  ;;  %v279_v54 = vld [vmem:[%s702_s3 + $0x68] sm:$0xff] }
  0x13   :  { %76 = vperm.xlu1 %422, %v30_v8   ;;  %71 = vperm.xlu0 %421, %v29_v9   ;;  %v280_v53 = vld [vmem:[%s702_s3 + $0x70] sm:$0xff] }
  0x1a   :  { %96 = vperm.xlu2 %423, %v34_v10  }
  0x1b   :  { %91 = vperm.xlu1 %422, %v33_v11   ;;  %86 = vperm.xlu0 %421, %v32_v12  }
  0x22   :  { %111 = vperm.xlu2 %423, %v37_v13  }
  0x23   :  { %106 = vperm.xlu1 %422, %v36_v14   ;;  %101 = vperm.xlu0 %421, %v35_v15  }
  0x2a   :  { %161 = vperm.xlu2 %423, %v139_v16   ;;  %v656_v16 = vld [vmem:[%s699_s0] ss:$0 sm:$0xff] }
  0x2b   :  { %156 = vperm.xlu1 %422, %v138_v17   ;;  %116 = vperm.xlu0 %421, %v38_v18  }
  0x32   :  { %176 = vperm.xlu2 %423, %v142_v19  }
  0x33   :  { %171 = vperm.xlu1 %422, %v141_v20   ;;  %166 = vperm.xlu0 %421, %v140_v21  }
  0x3a   :  { %191 = vperm.xlu2 %423, %v145_v22  }
  0x3b   :  { %186 = vperm.xlu1 %422, %v144_v23   ;;  %181 = vperm.xlu0 %421, %v143_v24  }
  0x42   :  { %206 = vperm.xlu2 %423, %v148_v25  }
  0x43   :  { %201 = vperm.xlu1 %422, %v147_v26   ;;  %196 = vperm.xlu0 %421, %v146_v27  }
  0x4a   :  { %221 = vperm.xlu2 %423, %v151_v28  }
  0x4b   :  { %216 = vperm.xlu1 %422, %v150_v29   ;;  %211 = vperm.xlu0 %421, %v149_v30  }
  0x52   :  { %284 = vperm.xlu2 %423, %v266_v31  }
  0x53   :  { %231 = vperm.xlu1 %422, %v153_v32   ;;  %226 = vperm.xlu0 %421, %v152_v33  }
  0x5a   :  { %299 = vperm.xlu2 %423, %v269_v34  }
  0x5b   :  { %294 = vperm.xlu1 %422, %v268_v35   ;;  %289 = vperm.xlu0 %421, %v267_v36  }
  0x5c   :  { %v591_v37 = vpop.permute.xlu2 %61 }
  0x5d   :  { %v126_v32 = vmul.f32 %v656_v16, %v591_v37 }
  0x62   :  { %314 = vperm.xlu2 %423, %v272_v38  }
  0x63   :  { %309 = vperm.xlu1 %422, %v271_v39   ;;  %304 = vperm.xlu0 %421, %v270_v40  }
  0x64   :  { %v602_v41 = vpop.permute.xlu2 %66 }
  0x65   :  { %v127_v36 = vmul.f32 %v656_v16, %v602_v41 }
  0x6a   :  { %329 = vperm.xlu2 %423, %v275_v42  }
  0x6b   :  { %324 = vperm.xlu1 %422, %v274_v43   ;;  %319 = vperm.xlu0 %421, %v273_v44  }
  0x6c   :  { %v613_v45 = vpop.permute.xlu2 %81 }
  0x6d   :  { %v130_v41 = vmul.f32 %v656_v16, %v613_v45 }
  0x72   :  { %344 = vperm.xlu2 %423, %v278_v46  }
  0x73   :  { %339 = vperm.xlu1 %422, %v277_v47   ;;  %334 = vperm.xlu0 %421, %v276_v48  }
  0x74   :  { %v624_v51 = vpop.permute.xlu2 %96 }
  0x75   :  { %v52_v49 = vpop.permute.xlu1 %51  ;;  %v42_v50 = vpop.permute.xlu0 %41 }
  0x76   :  { %v122_v19 = vmul.f32 %v656_v16, %v42_v50  ;;  %v124_v22 = vmul.f32 %v656_v16, %v52_v49 }
  0x7a   :  { %359 = vperm.xlu2 %423, %v281_v52  }
  0x7b   :  { %354 = vperm.xlu1 %422, %v280_v53   ;;  %349 = vperm.xlu0 %421, %v279_v54  }
  0x7c   :  { %v635_v57 = vpop.permute.xlu2 %111 }
  0x7d   :  { %v57_v55 = vpop.permute.xlu1 %56  ;;  %v47_v56 = vpop.permute.xlu0 %46 }
  0x7e   :  { %v123_v20 = vmul.f32 %v656_v16, %v47_v56  ;;  %v125_v25 = vmul.f32 %v656_v16, %v57_v55 }
  0x84   :  { %v162_v60 = vpop.permute.xlu2 %161 }
  0x85   :  { %v77_v58 = vpop.permute.xlu1 %76  ;;  %v72_v59 = vpop.permute.xlu0 %71  ;;  %v235_v23 = vadd.f32 %v162_v60, %v123_v20 }
  0x86   :  { %v128_v44 = vmul.f32 %v656_v16, %v72_v59  ;;  %v129_v54 = vmul.f32 %v656_v16, %v77_v58 }
  0x87   :  { %v251_v27 = vmax.f32 %v235_v23, 0.0 }
  0x8c   :  { %v177_v63 = vpop.permute.xlu2 %176 }
  0x8d   :  { %v637_v61 = vpop.permute.xlu1 %91  ;;  %v87_v62 = vpop.permute.xlu0 %86  ;;  %v238_v38 = vadd.f32 %v177_v63, %v126_v32 }
  0x8e   :  { %v131_v59 = vmul.f32 %v656_v16, %v87_v62  ;;  %v132_v23 = vmul.f32 %v656_v16, %v637_v61 }
  0x8f   :  { %v254_v49 = vmax.f32 %v238_v38, 0.0 }
  0x94   :  { %v192_v4 = vpop.permute.xlu2 %191 }
  0x95   :  { %v639_v0 = vpop.permute.xlu1 %106  ;;  %v641_v1 = vpop.permute.xlu0 %101  ;;  %v241_v60 = vadd.f32 %v192_v4, %v129_v54  ;;  %v133_v4 = vmul.f32 %v656_v16, %v624_v51 }
  0x96   :  { %v135_v51 = vmul.f32 %v656_v16, %v639_v0 }
  0x9c   :  { %v645_v7 = vpop.permute.xlu2 %206 }
  0x9d   :  { %v157_v2 = vpop.permute.xlu1 %156  ;;  %v643_v3 = vpop.permute.xlu0 %116 }
  0x9e   :  { %v234_v24 = vadd.f32 %v157_v2, %v122_v19  ;;  %v257_v19 = vmax.f32 %v241_v60, 0.0 }
  0xa0   :  { %v250_v28 = vmax.f32 %v234_v24, 0.0 }
  0xa4   :  { %v647_v10 = vpop.permute.xlu2 %221 }
  0xa5   :  { %v172_v5 = vpop.permute.xlu1 %171  ;;  %v167_v6 = vpop.permute.xlu0 %166 }
  0xa6   :  { %v236_v26 = vadd.f32 %v167_v6, %v124_v22  ;;  %v237_v29 = vadd.f32 %v172_v5, %v125_v25  ;;  %v244_v25 = vadd.f32 %v645_v7, %v132_v23 }
  0xa8   :  { %v252_v33 = vmax.f32 %v236_v26, 0.0  ;;  %v253_v39 = vmax.f32 %v237_v29, 0.0 }
  0xac   :  { %v285_v13 = vpop.permute.xlu2 %284 }
  0xad   :  { %v187_v8 = vpop.permute.xlu1 %186  ;;  %v182_v9 = vpop.permute.xlu0 %181  ;;  %v362_v34 = vmul.f32 %v285_v13, %v250_v28 }
  0xae   :  { %v239_v46 = vadd.f32 %v182_v9, %v127_v36  ;;  %v240_v50 = vadd.f32 %v187_v8, %v128_v44  ;;  %v136_v36 = vmul.f32 %v656_v16, %v635_v57 }
  0xb0   :  { %v255_v55 = vmax.f32 %v239_v46, 0.0  ;;  %v256_v63 = vmax.f32 %v240_v50, 0.0 }
  0xb4   :  { %v300_v21 = vpop.permute.xlu2 %299 }
  0xb5   :  { %v202_v11 = vpop.permute.xlu1 %201  ;;  %v197_v12 = vpop.permute.xlu0 %196  ;;  %v365_v47 = vmul.f32 %v300_v21, %v253_v39 }
  0xb6   :  { %v242_v6 = vadd.f32 %v197_v12, %v130_v41  ;;  %v243_v20 = vadd.f32 %v202_v11, %v131_v59 }
  0xb8   :  { %v258_v24 = vmax.f32 %v242_v6, 0.0  ;;  %v259_v62 = vmax.f32 %v243_v20, 0.0 }
  0xbc   :  { %v315_v40 = vpop.permute.xlu2 %314 }
  0xbd   :  { %v649_v14 = vpop.permute.xlu1 %216  ;;  %v651_v15 = vpop.permute.xlu0 %211  ;;  %v368_v9 = vmul.f32 %v315_v40, %v256_v63 }
  0xbe   :  { %v245_v11 = vadd.f32 %v651_v15, %v133_v4 }
  0xc0   :  { %v261_v7 = vmax.f32 %v245_v11, 0.0 }
  0xc4   :  { %v330_v13 = vpop.permute.xlu2 %329 }
  0xc5   :  { %v658_v17 = vpop.permute.xlu1 %231  ;;  %v660_v18 = vpop.permute.xlu0 %226  ;;  %v371_v28 = vmul.f32 %v330_v13, %v259_v62 }
  0xc6   :  { %v248_v40 = vadd.f32 %v660_v18, %v136_v36 }
  0xcd   :  { %v295_v30 = vpop.permute.xlu1 %294  ;;  %v290_v31 = vpop.permute.xlu0 %289 }
  0xce   :  { %v363_v35 = vmul.f32 %v290_v31, %v251_v27  ;;  %v364_v42 = vmul.f32 %v295_v30, %v252_v33  ;;  %v134_v27 = vmul.f32 %v656_v16, %v641_v1  ;;  %v260_v30 = vmax.f32 %v244_v25, 0.0  ;;  %v345_v31 = vpop.permute.xlu2 %344 }
  0xcf   :  { %v247_v1 = vadd.f32 %v647_v10, %v135_v51 }
  0xd0   :  { %v378_v43 = vadd.f32 %v363_v35, %v362_v34  ;;  %v246_v61 = vadd.f32 %v649_v14, %v134_v27  ;;  %v137_v14 = vmul.f32 %v656_v16, %v643_v3 }
  0xd1   :  { %v263_v44 = vmax.f32 %v247_v1, 0.0 }
  0xd2   :  { %v379_v48 = vadd.f32 %v378_v43, %v364_v42  ;;  %v262_v15 = vmax.f32 %v246_v61, 0.0  ;;  %v249_v0 = vadd.f32 %v658_v17, %v137_v14  ;;  %v400_v17 = vstv %s703_s4 }
  0xd4   :  { %v380_v52 = vadd.f32 %v379_v48, %v365_v47  ;;  %v374_v42 = vmul.f32 %v345_v31, %v262_v15  ;;  %v265_v10 = vmax.f32 %v249_v0, 0.0 }
  0xd5   :  { %v310_v37 = vpop.permute.xlu1 %309  ;;  %v305_v53 = vpop.permute.xlu0 %304 }
  0xd6   :  { %v366_v56 = vmul.f32 %v305_v53, %v254_v49  ;;  %v367_v2 = vmul.f32 %v310_v37, %v255_v55  ;;  %v264_v49 = vmax.f32 %v248_v40, 0.0  ;;  %v360_v50 = vpop.permute.xlu2 %359 }
  0xd7   :  { %v377_v53 = vmul.f32 %v360_v50, %v265_v10 }
  0xd8   :  { %v381_v5 = vadd.f32 %v380_v52, %v366_v56 }
  0xda   :  { %v382_v8 = vadd.f32 %v381_v5, %v367_v2 }
  0xdc   :  { %v383_v21 = vadd.f32 %v382_v8, %v368_v9 }
  0xdd   :  { %v325_v22 = vpop.permute.xlu1 %324  ;;  %v320_v58 = vpop.permute.xlu0 %319 }
  0xde   :  { %v369_v45 = vmul.f32 %v320_v58, %v257_v19  ;;  %v370_v12 = vmul.f32 %v325_v22, %v258_v24 }
  0xe0   :  { %v384_v26 = vadd.f32 %v383_v21, %v369_v45 }
  0xe2   :  { %v385_v29 = vadd.f32 %v384_v26, %v370_v12 }
  0xe4   :  { %v386_v32 = vadd.f32 %v385_v29, %v371_v28 }
  0xe5   :  { %v340_v33 = vpop.permute.xlu1 %339  ;;  %v335_v34 = vpop.permute.xlu0 %334 }
  0xe6   :  { %v372_v35 = vmul.f32 %v335_v34, %v260_v30  ;;  %v373_v38 = vmul.f32 %v340_v33, %v261_v7 }
  0xe8   :  { %v387_v39 = vadd.f32 %v386_v32, %v372_v35 }
  0xea   :  { %v388_v43 = vadd.f32 %v387_v39, %v373_v38 }
  0xec   :  { %v389_v46 = vadd.f32 %v388_v43, %v374_v42 }
  0xed   :  { %v355_v47 = vpop.permute.xlu1 %354  ;;  %v350_v48 = vpop.permute.xlu0 %349 }
  0xee   :  { %v375_v57 = vmul.f32 %v350_v48, %v263_v44  ;;  %v376_v52 = vmul.f32 %v355_v47, %v264_v49 }
  0xf0   :  { %v390_v37 = vadd.f32 %v389_v46, %v375_v57 }
  0xf2   :  { %v391_v54 = vadd.f32 %v390_v37, %v376_v52 }
  0xf4   :  { %v392_v55 = vadd.f32 %v391_v54, %v377_v53 }
  0xf6   :  { %v393_v3 = vrot.slane %v392_v55, 4 }
  0xf8   :  { %v394_v16 = vadd.f32 %v393_v3, %v392_v55 }
  0xfa   :  { %v395_v18 = vrot.slane %v394_v16, 2 }
  0xfc   :  { %v396_v56 = vadd.f32 %v395_v18, %v394_v16 }
  0xfe   :  { %v397_v41 = vrot.slane %v396_v56, 1 }
 0x100   :  { %v398_v60 = vadd.f32 %v397_v41, %v396_v56 }
 0x102   :  { %v401_v63 = vadd.f32 %v400_v17, %v398_v60 }
 0x104   :  { %402 = vst [vmem:[#allocation3] sm:$0x1] %v401_v63 }
 0x105   :  { %413 = dma.vmem_to_hbm [thread:$0]  %s409_s2, 16, %s411_s15, [#allocation4]  }
 0x106   :  { %449 = dma.done.wait [#allocation4], 16  }
 0x107   :  { %450 = vsyncadd [#allocation4], 4294967280 }
 0x108   :  { %418 = vsyncpa [#allocation4], 1 }

</bundles_post_ra>
